<compile_context>
chip_gen: v7x
topology: tpu7x:2x2x1
jax: 0.10.0
libtpu: 0.0.40
codegen_flags: <defaults>
</compile_context>

<pallas_src>
import functools

import numpy as np
import jax
import jax.numpy as jnp
from jax.experimental import pallas as pl
from jax.experimental.pallas import tpu as pltpu


# ---------------------------------------------------------------------------
# Host-side construction of the (tiny, deterministic) resize weight matrices.
# ---------------------------------------------------------------------------
def _bilinear_weights(in_size: int, out_size: int) -> np.ndarray:
    """Rows reproduce F.interpolate(mode='bilinear', align_corners=False)."""
    scale = in_size / out_size
    dst = np.arange(out_size, dtype=np.float64)
    src = np.maximum((dst + 0.5) * scale - 0.5, 0.0)
    i0 = np.minimum(np.floor(src).astype(np.int64), in_size - 1)
    i1 = np.minimum(i0 + 1, in_size - 1)
    lam = (src - i0).astype(np.float32)
    w = np.zeros((out_size, in_size), dtype=np.float32)
    rows = np.arange(out_size)
    np.add.at(w, (rows, i0), 1.0 - lam)
    np.add.at(w, (rows, i1), lam)
    return w


def _nearest_index(in_size: int, out_size: int) -> np.ndarray:
    scale = in_size / out_size
    return np.minimum(np.floor(np.arange(out_size) * scale).astype(np.int64),
                      in_size - 1)


def _nearest_weights(in_size: int, out_size: int) -> np.ndarray:
    """One-hot rows reproducing F.interpolate(mode='nearest')."""
    w = np.zeros((out_size, in_size), dtype=np.float32)
    w[np.arange(out_size), _nearest_index(in_size, out_size)] = 1.0
    return w


# ---------------------------------------------------------------------------
# Fused kernel: one grid step == B_tile batch elements (image + depth).
# ---------------------------------------------------------------------------
def _fused_kernel(wh_ref, wwt_ref, nh_ref, nwt_ref, img_ref, dep_ref,
                  img_o_ref, inv_o_ref, mask_o_ref, *,
                  b_tile, c_img, c_dep, hi, ho, hdi, bias, eps):
    # ---- image: separable bilinear resize.  W pass over the whole
    # batch/channel-stacked slab (one big bf16 MXU matmul, f32 accumulate).
    xw = jnp.dot(img_ref[...], wwt_ref[...],
                 preferred_element_type=jnp.float32)           # (B*C*Hi, Wo)
    xw = xw.astype(jnp.bfloat16)                               # bf16 for the H pass
    wh = wh_ref[...]                                           # (Ho, Hi) bf16, x(1/std) folded
    for k in range(b_tile * c_img):                            # per-(batch,channel) H pass
        y = jnp.dot(wh, xw[k * hi:(k + 1) * hi, :],
                    preferred_element_type=jnp.float32)        # (Ho, Wo)
        img_o_ref[k * ho:(k + 1) * ho, :] = y + bias           # scale already in wh

    # ---- depth: nearest resize via exact f32 one-hot matmuls (value copy is
    # exact, so the `> 0` mask is exact), then mask + guarded inverse depth.
    # NOTE: for integer ratios a sublane/lane repeat would free the MXU, but
    # with Cd == 1 the one-hot matmuls are negligible and fully general.
    dw = jnp.dot(dep_ref[...], nwt_ref[...],
                 preferred_element_type=jnp.float32)           # (B*Cd*Hdi, Wo)
    nh = nh_ref[...]                                           # (Ho, Hdi) f32 one-hot
    for k in range(b_tile * c_dep):
        dr = jnp.dot(nh, dw[k * hdi:(k + 1) * hdi, :],
                     preferred_element_type=jnp.float32)       # (Ho, Wo)
        valid = dr > 0.0
        mask_o_ref[k * ho:(k + 1) * ho, :] = valid.astype(jnp.float32)
        inv_o_ref[k * ho:(k + 1) * ho, :] = jnp.where(
            valid, pl.reciprocal(dr + eps, approx=True), 0.0)


# ---------------------------------------------------------------------------
# Batch-tile selection (amortize per-step overhead, keep >=2 parallel steps).
# ---------------------------------------------------------------------------
def _pick_batch_tile(n, rows_per_elem, per_elem_bytes, budget_bytes=8 << 20):
    """Largest divisor of n that (a) keeps per-step blocks under budget_bytes,
    (b) keeps >= 2 grid steps when n >= 2 (megacore / v7x dual TensorCore),
    and (c) keeps every block's sublane extent 8-aligned (or full-array)."""
    candidates = []
    for bt in range(1, n + 1):
        if n % bt:
            continue
        rows_ok = (bt == n) or all((bt * r) % 8 == 0 for r in rows_per_elem)
        if rows_ok and bt * per_elem_bytes <= budget_bytes:
            candidates.append(bt)
    if not candidates:
        return n                               # full-array blocks always legal
    multi = [bt for bt in candidates if n // bt >= 2]
    return max(multi) if (n >= 2 and multi) else max(candidates)


# ---------------------------------------------------------------------------
# Wrapper
# ---------------------------------------------------------------------------
def preprocess_and_resize(img, depth, size=(384, 384)):
    img = jnp.asarray(img, jnp.float32)
    depth = jnp.asarray(depth, jnp.float32)
    if img.ndim == 3:
        img = img[None]
    if depth.ndim == 3:
        depth = depth[None]

    N, C, Hi, Wi = img.shape
    Nd, Cd, Hdi, Wdi = depth.shape
    assert N == Nd, "image / depth batch sizes must match"
    Ho, Wo = size

    # Normalize(mean=0.5, std=0.5): 1/std (= 2.0, exact) folded into wh below.
    mean, std = 0.5, 0.5
    bias = -mean / std

    # Per-channel separable resize weights (no block-diagonal inflation).
    wh = jnp.asarray(_bilinear_weights(Hi, Ho) * (1.0 / std), jnp.bfloat16)   # (Ho, Hi)
    wwt = jnp.asarray(_bilinear_weights(Wi, Wo).T, jnp.bfloat16)              # (Wi, Wo)
    nh = jnp.asarray(_nearest_weights(Hdi, Ho))                               # (Ho, Hdi) f32
    nwt = jnp.asarray(_nearest_weights(Wdi, Wo).T)                            # (Wdi, Wo) f32

    # Batch/channel-stacked 2-D slabs (free reshapes).  Image in bf16 (halves
    # slab DMA, bf16 MXU rate); depth stays f32 for exact value copy / mask.
    img2 = img.reshape(N * C * Hi, Wi).astype(jnp.bfloat16)
    dep2 = depth.reshape(N * Cd * Hdi, Wdi)

    per_elem_bytes = (C * Hi * Wi * 2 + Cd * Hdi * Wdi * 4
                      + (C + 2 * Cd) * Ho * Wo * 4)
    b_tile = _pick_batch_tile(N, (C * Hi, Cd * Hdi, C * Ho, Cd * Ho),
                              per_elem_bytes)
    steps = N // b_tile

    # VMEM budget: double-buffered slabs/outputs + weights + matmul scratch.
    # Always set (v5e default scoped VMEM is only 16 MiB); cap at 85% of the
    # physical VMEM reported for this generation (headroom on v7x's 64 MiB).
    in_block = b_tile * (C * Hi * Wi * 2 + Cd * Hdi * Wdi * 4)
    out_block = b_tile * (C + 2 * Cd) * Ho * Wo * 4
    weight_bytes = (wh.size + wwt.size) * 2 + (nh.size + nwt.size) * 4
    inter_bytes = b_tile * (C * Hi * Wo * 2 + Cd * Hdi * Wo * 4) + 8 * Ho * Wo * 4
    vmem_needed = 2 * (in_block + out_block) + 2 * weight_bytes + inter_bytes + (4 << 20)
    try:
        vmem_cap = int(pltpu.get_tpu_info().vmem_capacity_bytes)
    except Exception:
        vmem_cap = 64 << 20                    # v7x-safe fallback
    vmem_limit = int(min(max(vmem_needed, 32 << 20), int(vmem_cap * 0.85)))

    # Advisory cost estimate for the XLA scheduler (per-channel H pass FLOPs).
    flops = 2 * N * (C * Hi * Wi * Wo + C * Ho * Hi * Wo
                     + Cd * Hdi * Wdi * Wo + Cd * Ho * Hdi * Wo)
    bytes_accessed = (img2.size * 2 + dep2.size * 4
                      + N * (C + 2 * Cd) * Ho * Wo * 4 + weight_bytes)
    cost = pl.CostEstimate(flops=flops, transcendentals=N * Cd * Ho * Wo,
                           bytes_accessed=bytes_accessed)

    kern = functools.partial(_fused_kernel, b_tile=b_tile, c_img=C, c_dep=Cd,
                             hi=Hi, ho=Ho, hdi=Hdi, bias=bias, eps=1e-6)

    def _call(single_buffer_weights):
        def wspec(shape):
            if single_buffer_weights:
                # Constant index_map -> fetched once; a single buffer halves
                # the resident weight VMEM (no pipelining benefit was lost).
                return pl.BlockSpec(shape, lambda n: (0, 0),
                                    pipeline_mode=pl.Buffered(1))
            return pl.BlockSpec(shape, lambda n: (0, 0))

        return pl.pallas_call(
            kern,
            out_shape=(jax.ShapeDtypeStruct((N * C * Ho, Wo), jnp.float32),
                       jax.ShapeDtypeStruct((N * Cd * Ho, Wo), jnp.float32),
                       jax.ShapeDtypeStruct((N * Cd * Ho, Wo), jnp.float32)),
            grid=(steps,),
            in_specs=[
                wspec((Ho, Hi)),                                       # bilinear H (x 1/std)
                wspec((Wi, Wo)),                                       # bilinear W^T
                wspec((Ho, Hdi)),                                      # nearest H (one-hot)
                wspec((Wdi, Wo)),                                      # nearest W^T (one-hot)
                pl.BlockSpec((b_tile * C * Hi, Wi), lambda n: (n, 0)),   # image slab
                pl.BlockSpec((b_tile * Cd * Hdi, Wdi), lambda n: (n, 0)),  # depth slab
            ],
            out_specs=(
                pl.BlockSpec((b_tile * C * Ho, Wo), lambda n: (n, 0)),
                pl.BlockSpec((b_tile * Cd * Ho, Wo), lambda n: (n, 0)),
                pl.BlockSpec((b_tile * Cd * Ho, Wo), lambda n: (n, 0)),
            ),
            compiler_params=pltpu.CompilerParams(
                dimension_semantics=("parallel",),
                vmem_limit_bytes=vmem_limit),
            cost_estimate=cost,
        )(wh, wwt, nh, nwt, img2, dep2)

    try:
        img_o, inv_o, mask_o = _call(True)
    except Exception:
        # Fallback for JAX versions where `pipeline_mode` is not accepted on
        # top-level pallas_call BlockSpecs; semantics are identical.
        img_o, inv_o, mask_o = _call(False)

    img_out = img_o.reshape(N, C, Ho, Wo)
    inv_depth = inv_o.reshape(N, Cd, Ho, Wo)
    valid_mask = mask_o.reshape(N, Cd, Ho, Wo)

    # PyTorch `.squeeze(0)` only drops dim 0 when its size is 1.
    if valid_mask.shape[0] == 1:
        valid_mask = jnp.squeeze(valid_mask, axis=0)
    return img_out, inv_depth, valid_mask


if __name__ == "__main__":
    key = jax.random.PRNGKey(0)
    k_img, k_depth, k_mask = jax.random.split(key, 3)

    # Small shapes: batch=2, 3-channel image, 1-channel depth, 16x16 -> 32x32.
    img = jax.random.uniform(k_img, (2, 3, 16, 16), dtype=jnp.float32)
    depth_raw = jax.random.uniform(k_depth, (2, 1, 16, 16), dtype=jnp.float32) * 10.0
    holes = jax.random.uniform(k_mask, (2, 1, 16, 16)) > 0.3
    depth = depth_raw * holes.astype(jnp.float32)   # zeros -> invalid pixels

    img_out, inv_depth, valid_mask = preprocess_and_resize(img, depth, size=(32, 32))
    jax.block_until_ready((img_out, inv_depth, valid_mask))

    assert img_out.shape == (2, 3, 32, 32)
    assert inv_depth.shape == (2, 1, 32, 32)
    assert valid_mask.shape == (2, 1, 32, 32)

    # Host float64 reference using the same resize conventions as PyTorch.
    img64 = np.asarray(img, np.float64)
    wh64 = _bilinear_weights(16, 32).astype(np.float64) * 2.0
    ww64 = _bilinear_weights(16, 32).astype(np.float64)
    ref_img = np.einsum('oh,nchw,pw->ncop', wh64, img64, ww64) - 1.0
    assert float(np.max(np.abs(np.asarray(img_out, np.float64) - ref_img))) < 5e-2

    dep64 = np.asarray(depth, np.float64)
    idx = _nearest_index(16, 32)
    ref_d = dep64[:, :, idx][:, :, :, idx]
    ref_mask = (ref_d > 0).astype(np.float64)
    ref_inv = np.where(ref_d > 0, 1.0 / (ref_d + 1e-6), 0.0)
    assert np.array_equal(np.asarray(valid_mask, np.float64), ref_mask)
    rel = np.abs(np.asarray(inv_depth, np.float64) - ref_inv) / np.maximum(ref_inv, 1e-12)
    assert float(np.max(np.where(ref_mask > 0, rel, 0.0))) < 1e-2
    assert bool(jnp.all(jnp.where(valid_mask == 0.0, inv_depth == 0.0, True)))

    print("KERNEL_OK")
</pallas_src>

<mosaic_0001>
module attributes {stable_mosaic.version = 11 : i64} {
  func.func @_fused_kernel(%arg0: i32, %arg1: memref<32x16xbf16, #tpu.memory_space<vmem>>, %arg2: memref<16x32xbf16, #tpu.memory_space<vmem>>, %arg3: memref<32x16xf32, #tpu.memory_space<vmem>>, %arg4: memref<16x32xf32, #tpu.memory_space<vmem>>, %arg5: memref<48x16xbf16, #tpu.memory_space<vmem>>, %arg6: memref<16x16xf32, #tpu.memory_space<vmem>>, %arg7: memref<96x32xf32, #tpu.memory_space<vmem>>, %arg8: memref<32x32xf32, #tpu.memory_space<vmem>>, %arg9: memref<32x32xf32, #tpu.memory_space<vmem>>) attributes {dimension_semantics = [#tpu.dimension_semantics<parallel>], iteration_bounds = array<i64: 2>, scalar_prefetch = 0 : i64, scratch_operands = 0 : i64, tpu.core_type = #tpu.core_type<tc>, window_params = [{pipeline_mode = #tpu.pipeline_mode<synchronous>, transform_indices = @transform_0, window_bounds = array<i64: 32, 16>}, {pipeline_mode = #tpu.pipeline_mode<synchronous>, transform_indices = @transform_1, window_bounds = array<i64: 16, 32>}, {pipeline_mode = #tpu.pipeline_mode<synchronous>, transform_indices = @transform_2, window_bounds = array<i64: 32, 16>}, {pipeline_mode = #tpu.pipeline_mode<synchronous>, transform_indices = @transform_3, window_bounds = array<i64: 16, 32>}, {transform_indices = @transform_4, window_bounds = array<i64: 48, 16>}, {transform_indices = @transform_5, window_bounds = array<i64: 16, 16>}, {transform_indices = @transform_6, window_bounds = array<i64: 96, 32>}, {transform_indices = @transform_7, window_bounds = array<i64: 32, 32>}, {transform_indices = @transform_8, window_bounds = array<i64: 32, 32>}]} {
    %c0 = arith.constant 0 : index
    %c0_0 = arith.constant 0 : index
    %0 = vector.load %arg5[%c0, %c0_0] : memref<48x16xbf16, #tpu.memory_space<vmem>>, vector<48x16xbf16>
    %c0_1 = arith.constant 0 : index
    %c0_2 = arith.constant 0 : index
    %1 = vector.load %arg2[%c0_1, %c0_2] : memref<16x32xbf16, #tpu.memory_space<vmem>>, vector<16x32xbf16>
    %cst = arith.constant dense<0.000000e+00> : vector<48x32xf32>
    %2 = tpu.matmul %0, %1, %cst {dimension_numbers = #tpu.dot_dimension_numbers<[1], [0], [0], [1], [0, 0, 1, 1], [], []>} : vector<48x16xbf16>, vector<16x32xbf16>, vector<48x32xf32> -> vector<48x32xf32>
    %3 = arith.truncf %2 : vector<48x32xf32> to vector<48x32xbf16>
    %c0_3 = arith.constant 0 : index
    %c0_4 = arith.constant 0 : index
    %4 = vector.load %arg1[%c0_3, %c0_4] : memref<32x16xbf16, #tpu.memory_space<vmem>>, vector<32x16xbf16>
    %5 = vector.extract_strided_slice %3 {offsets = [0, 0], sizes = [16, 32], strides = [1, 1]} : vector<48x32xbf16> to vector<16x32xbf16>
    %cst_5 = arith.constant dense<0.000000e+00> : vector<32x32xf32>
    %6 = tpu.matmul %4, %5, %cst_5 {dimension_numbers = #tpu.dot_dimension_numbers<[1], [0], [0], [1], [0, 0, 1, 1], [], []>} : vector<32x16xbf16>, vector<16x32xbf16>, vector<32x32xf32> -> vector<32x32xf32>
    %cst_6 = arith.constant -1.000000e+00 : f32
    %7 = vector.broadcast %cst_6 : f32 to vector<32x32xf32>
    %8 = arith.addf %6, %7 : vector<32x32xf32>
    %c0_7 = arith.constant 0 : index
    %c0_8 = arith.constant 0 : index
    %9 = vector.load %arg7[%c0_7, %c0_8] : memref<96x32xf32, #tpu.memory_space<vmem>>, vector<32x32xf32>
    tpu.vector_store %arg7[%c0_7, %c0_8], %8 {strides = array<i32>} : memref<96x32xf32, #tpu.memory_space<vmem>>, vector<32x32xf32>,
    %10 = vector.extract_strided_slice %3 {offsets = [16, 0], sizes = [16, 32], strides = [1, 1]} : vector<48x32xbf16> to vector<16x32xbf16>
    %cst_9 = arith.constant dense<0.000000e+00> : vector<32x32xf32>
    %11 = tpu.matmul %4, %10, %cst_9 {dimension_numbers = #tpu.dot_dimension_numbers<[1], [0], [0], [1], [0, 0, 1, 1], [], []>} : vector<32x16xbf16>, vector<16x32xbf16>, vector<32x32xf32> -> vector<32x32xf32>
    %cst_10 = arith.constant -1.000000e+00 : f32
    %12 = vector.broadcast %cst_10 : f32 to vector<32x32xf32>
    %13 = arith.addf %11, %12 : vector<32x32xf32>
    %c32 = arith.constant 32 : index
    %c0_11 = arith.constant 0 : index
    %14 = vector.load %arg7[%c32, %c0_11] : memref<96x32xf32, #tpu.memory_space<vmem>>, vector<32x32xf32>
    tpu.vector_store %arg7[%c32, %c0_11], %13 {strides = array<i32>} : memref<96x32xf32, #tpu.memory_space<vmem>>, vector<32x32xf32>,
    %15 = vector.extract_strided_slice %3 {offsets = [32, 0], sizes = [16, 32], strides = [1, 1]} : vector<48x32xbf16> to vector<16x32xbf16>
    %cst_12 = arith.constant dense<0.000000e+00> : vector<32x32xf32>
    %16 = tpu.matmul %4, %15, %cst_12 {dimension_numbers = #tpu.dot_dimension_numbers<[1], [0], [0], [1], [0, 0, 1, 1], [], []>} : vector<32x16xbf16>, vector<16x32xbf16>, vector<32x32xf32> -> vector<32x32xf32>
    %cst_13 = arith.constant -1.000000e+00 : f32
    %17 = vector.broadcast %cst_13 : f32 to vector<32x32xf32>
    %18 = arith.addf %16, %17 : vector<32x32xf32>
    %c64 = arith.constant 64 : index
    %c0_14 = arith.constant 0 : index
    %19 = vector.load %arg7[%c64, %c0_14] : memref<96x32xf32, #tpu.memory_space<vmem>>, vector<32x32xf32>
    tpu.vector_store %arg7[%c64, %c0_14], %18 {strides = array<i32>} : memref<96x32xf32, #tpu.memory_space<vmem>>, vector<32x32xf32>,
    %c0_15 = arith.constant 0 : index
    %c0_16 = arith.constant 0 : index
    %20 = vector.load %arg6[%c0_15, %c0_16] : memref<16x16xf32, #tpu.memory_space<vmem>>, vector<16x16xf32>
    %c0_17 = arith.constant 0 : index
    %c0_18 = arith.constant 0 : index
    %21 = vector.load %arg4[%c0_17, %c0_18] : memref<16x32xf32, #tpu.memory_space<vmem>>, vector<16x32xf32>
    %cst_19 = arith.constant dense<0.000000e+00> : vector<16x32xf32>
    %22 = tpu.matmul %20, %21, %cst_19 {dimension_numbers = #tpu.dot_dimension_numbers<[1], [0], [0], [1], [0, 0, 1, 1], [], []>} : vector<16x16xf32>, vector<16x32xf32>, vector<16x32xf32> -> vector<16x32xf32>
    %c0_20 = arith.constant 0 : index
    %c0_21 = arith.constant 0 : index
    %23 = vector.load %arg3[%c0_20, %c0_21] : memref<32x16xf32, #tpu.memory_space<vmem>>, vector<32x16xf32>
    %cst_22 = arith.constant dense<0.000000e+00> : vector<32x32xf32>
    %24 = tpu.matmul %23, %22, %cst_22 {dimension_numbers = #tpu.dot_dimension_numbers<[1], [0], [0], [1], [0, 0, 1, 1], [], []>} : vector<32x16xf32>, vector<16x32xf32>, vector<32x32xf32> -> vector<32x32xf32>
    %cst_23 = arith.constant 0.000000e+00 : f32
    %25 = vector.broadcast %cst_23 : f32 to vector<32x32xf32>
    %26 = arith.cmpf ogt, %24, %25 : vector<32x32xf32>
    %27 = arith.extui %26 : vector<32x32xi1> to vector<32x32xi32>
    %28 = arith.sitofp %27 : vector<32x32xi32> to vector<32x32xf32>
    %c0_24 = arith.constant 0 : index
    %c0_25 = arith.constant 0 : index
    %29 = vector.load %arg9[%c0_24, %c0_25] : memref<32x32xf32, #tpu.memory_space<vmem>>, vector<32x32xf32>
    tpu.vector_store %arg9[%c0_24, %c0_25], %28 {strides = array<i32>} : memref<32x32xf32, #tpu.memory_space<vmem>>, vector<32x32xf32>,
    %cst_26 = arith.constant 9.99999997E-7 : f32
    %30 = vector.broadcast %cst_26 : f32 to vector<32x32xf32>
    %31 = arith.addf %24, %30 : vector<32x32xf32>
    %32 = tpu.reciprocal %31 {approx = true} : vector<32x32xf32> -> vector<32x32xf32>
    %cst_27 = arith.constant 0.000000e+00 : f32
    %33 = vector.broadcast %cst_27 : f32 to vector<32x32xf32>
    %34 = arith.select %26, %32, %33 : vector<32x32xi1>, vector<32x32xf32>
    %c0_28 = arith.constant 0 : index
    %c0_29 = arith.constant 0 : index
    %35 = vector.load %arg8[%c0_28, %c0_29] : memref<32x32xf32, #tpu.memory_space<vmem>>, vector<32x32xf32>
    tpu.vector_store %arg8[%c0_28, %c0_29], %34 {strides = array<i32>} : memref<32x32xf32, #tpu.memory_space<vmem>>, vector<32x32xf32>,
    return
  }
  func.func @transform_0(%arg0: i32) -> (i32, i32) {
    %c0_i32 = arith.constant 0 : i32
    %c0_i32_0 = arith.constant 0 : i32
    %c0_i32_1 = arith.constant 0 : i32
    return %c0_i32, %c0_i32_0 : i32, i32
  }
  func.func @transform_1(%arg0: i32) -> (i32, i32) {
    %c0_i32 = arith.constant 0 : i32
    %c0_i32_0 = arith.constant 0 : i32
    %c0_i32_1 = arith.constant 0 : i32
    return %c0_i32, %c0_i32_0 : i32, i32
  }
  func.func @transform_2(%arg0: i32) -> (i32, i32) {
    %c0_i32 = arith.constant 0 : i32
    %c0_i32_0 = arith.constant 0 : i32
    %c0_i32_1 = arith.constant 0 : i32
    return %c0_i32, %c0_i32_0 : i32, i32
  }
  func.func @transform_3(%arg0: i32) -> (i32, i32) {
    %c0_i32 = arith.constant 0 : i32
    %c0_i32_0 = arith.constant 0 : i32
    %c0_i32_1 = arith.constant 0 : i32
    return %c0_i32, %c0_i32_0 : i32, i32
  }
  func.func @transform_4(%arg0: i32) -> (i32, i32) {
    %c0_i32 = arith.constant 0 : i32
    %c0_i32_0 = arith.constant 0 : i32
    return %arg0, %c0_i32 : i32, i32
  }
  func.func @transform_5(%arg0: i32) -> (i32, i32) {
    %c0_i32 = arith.constant 0 : i32
    %c0_i32_0 = arith.constant 0 : i32
    return %arg0, %c0_i32 : i32, i32
  }
  func.func @transform_6(%arg0: i32) -> (i32, i32) {
    %c0_i32 = arith.constant 0 : i32
    %c0_i32_0 = arith.constant 0 : i32
    return %arg0, %c0_i32 : i32, i32
  }
  func.func @transform_7(%arg0: i32) -> (i32, i32) {
    %c0_i32 = arith.constant 0 : i32
    %c0_i32_0 = arith.constant 0 : i32
    return %arg0, %c0_i32 : i32, i32
  }
  func.func @transform_8(%arg0: i32) -> (i32, i32) {
    %c0_i32 = arith.constant 0 : i32
    %c0_i32_0 = arith.constant 0 : i32
    return %arg0, %c0_i32 : i32, i32
  }
}

module attributes {stable_mosaic.version = 11 : i64} {
  func.func @_fused_kernel(%arg0: i32, %arg1: memref<32x16xbf16, #tpu.memory_space<vmem>>, %arg2: memref<16x32xbf16, #tpu.memory_space<vmem>>, %arg3: memref<32x16xf32, #tpu.memory_space<vmem>>, %arg4: memref<16x32xf32, #tpu.memory_space<vmem>>, %arg5: memref<48x16xbf16, #tpu.memory_space<vmem>>, %arg6: memref<16x16xf32, #tpu.memory_space<vmem>>, %arg7: memref<96x32xf32, #tpu.memory_space<vmem>>, %arg8: memref<32x32xf32, #tpu.memory_space<vmem>>, %arg9: memref<32x32xf32, #tpu.memory_space<vmem>>) attributes {dimension_semantics = [#tpu.dimension_semantics<parallel>], iteration_bounds = array<i64: 2>, scalar_prefetch = 0 : i64, scratch_operands = 0 : i64, tpu.core_type = #tpu.core_type<tc>, window_params = [{pipeline_mode = #tpu.pipeline_mode<synchronous>, transform_indices = @transform_0, window_bounds = array<i64: 32, 16>}, {pipeline_mode = #tpu.pipeline_mode<synchronous>, transform_indices = @transform_1, window_bounds = array<i64: 16, 32>}, {pipeline_mode = #tpu.pipeline_mode<synchronous>, transform_indices = @transform_2, window_bounds = array<i64: 32, 16>}, {pipeline_mode = #tpu.pipeline_mode<synchronous>, transform_indices = @transform_3, window_bounds = array<i64: 16, 32>}, {transform_indices = @transform_4, window_bounds = array<i64: 48, 16>}, {transform_indices = @transform_5, window_bounds = array<i64: 16, 16>}, {transform_indices = @transform_6, window_bounds = array<i64: 96, 32>}, {transform_indices = @transform_7, window_bounds = array<i64: 32, 32>}, {transform_indices = @transform_8, window_bounds = array<i64: 32, 32>}]} {
    %c0 = arith.constant 0 : index
    %c0_0 = arith.constant 0 : index
    %0 = vector.load %arg5[%c0, %c0_0] : memref<48x16xbf16, #tpu.memory_space<vmem>>, vector<48x16xbf16>
    %c0_1 = arith.constant 0 : index
    %c0_2 = arith.constant 0 : index
    %1 = vector.load %arg2[%c0_1, %c0_2] : memref<16x32xbf16, #tpu.memory_space<vmem>>, vector<16x32xbf16>
    %cst = arith.constant dense<0.000000e+00> : vector<48x32xf32>
    %2 = tpu.matmul %0, %1, %cst {dimension_numbers = #tpu.dot_dimension_numbers<[1], [0], [0], [1], [0, 0, 1, 1], [], []>} : vector<48x16xbf16>, vector<16x32xbf16>, vector<48x32xf32> -> vector<48x32xf32>
    %3 = arith.truncf %2 : vector<48x32xf32> to vector<48x32xbf16>
    %c0_3 = arith.constant 0 : index
    %c0_4 = arith.constant 0 : index
    %4 = vector.load %arg1[%c0_3, %c0_4] : memref<32x16xbf16, #tpu.memory_space<vmem>>, vector<32x16xbf16>
    %5 = vector.extract_strided_slice %3 {offsets = [0, 0], sizes = [16, 32], strides = [1, 1]} : vector<48x32xbf16> to vector<16x32xbf16>
    %cst_5 = arith.constant dense<0.000000e+00> : vector<32x32xf32>
    %6 = tpu.matmul %4, %5, %cst_5 {dimension_numbers = #tpu.dot_dimension_numbers<[1], [0], [0], [1], [0, 0, 1, 1], [], []>} : vector<32x16xbf16>, vector<16x32xbf16>, vector<32x32xf32> -> vector<32x32xf32>
    %cst_6 = arith.constant -1.000000e+00 : f32
    %7 = vector.broadcast %cst_6 : f32 to vector<32x32xf32>
    %8 = arith.addf %6, %7 : vector<32x32xf32>
    %c0_7 = arith.constant 0 : index
    %c0_8 = arith.constant 0 : index
    %9 = vector.load %arg7[%c0_7, %c0_8] : memref<96x32xf32, #tpu.memory_space<vmem>>, vector<32x32xf32>
    tpu.vector_store %arg7[%c0_7, %c0_8], %8 {strides = array<i32>} : memref<96x32xf32, #tpu.memory_space<vmem>>, vector<32x32xf32>,
    %10 = vector.extract_strided_slice %3 {offsets = [16, 0], sizes = [16, 32], strides = [1, 1]} : vector<48x32xbf16> to vector<16x32xbf16>
    %cst_9 = arith.constant dense<0.000000e+00> : vector<32x32xf32>
    %11 = tpu.matmul %4, %10, %cst_9 {dimension_numbers = #tpu.dot_dimension_numbers<[1], [0], [0], [1], [0, 0, 1, 1], [], []>} : vector<32x16xbf16>, vector<16x32xbf16>, vector<32x32xf32> -> vector<32x32xf32>
    %cst_10 = arith.constant -1.000000e+00 : f32
    %12 = vector.broadcast %cst_10 : f32 to vector<32x32xf32>
    %13 = arith.addf %11, %12 : vector<32x32xf32>
    %c32 = arith.constant 32 : index
    %c0_11 = arith.constant 0 : index
    %14 = vector.load %arg7[%c32, %c0_11] : memref<96x32xf32, #tpu.memory_space<vmem>>, vector<32x32xf32>
    tpu.vector_store %arg7[%c32, %c0_11], %13 {strides = array<i32>} : memref<96x32xf32, #tpu.memory_space<vmem>>, vector<32x32xf32>,
    %15 = vector.extract_strided_slice %3 {offsets = [32, 0], sizes = [16, 32], strides = [1, 1]} : vector<48x32xbf16> to vector<16x32xbf16>
    %cst_12 = arith.constant dense<0.000000e+00> : vector<32x32xf32>
    %16 = tpu.matmul %4, %15, %cst_12 {dimension_numbers = #tpu.dot_dimension_numbers<[1], [0], [0], [1], [0, 0, 1, 1], [], []>} : vector<32x16xbf16>, vector<16x32xbf16>, vector<32x32xf32> -> vector<32x32xf32>
    %cst_13 = arith.constant -1.000000e+00 : f32
    %17 = vector.broadcast %cst_13 : f32 to vector<32x32xf32>
    %18 = arith.addf %16, %17 : vector<32x32xf32>
    %c64 = arith.constant 64 : index
    %c0_14 = arith.constant 0 : index
    %19 = vector.load %arg7[%c64, %c0_14] : memref<96x32xf32, #tpu.memory_space<vmem>>, vector<32x32xf32>
    tpu.vector_store %arg7[%c64, %c0_14], %18 {strides = array<i32>} : memref<96x32xf32, #tpu.memory_space<vmem>>, vector<32x32xf32>,
    %c0_15 = arith.constant 0 : index
    %c0_16 = arith.constant 0 : index
    %20 = vector.load %arg6[%c0_15, %c0_16] : memref<16x16xf32, #tpu.memory_space<vmem>>, vector<16x16xf32>
    %c0_17 = arith.constant 0 : index
    %c0_18 = arith.constant 0 : index
    %21 = vector.load %arg4[%c0_17, %c0_18] : memref<16x32xf32, #tpu.memory_space<vmem>>, vector<16x32xf32>
    %cst_19 = arith.constant dense<0.000000e+00> : vector<16x32xf32>
    %22 = tpu.matmul %20, %21, %cst_19 {dimension_numbers = #tpu.dot_dimension_numbers<[1], [0], [0], [1], [0, 0, 1, 1], [], []>} : vector<16x16xf32>, vector<16x32xf32>, vector<16x32xf32> -> vector<16x32xf32>
    %c0_20 = arith.constant 0 : index
    %c0_21 = arith.constant 0 : index
    %23 = vector.load %arg3[%c0_20, %c0_21] : memref<32x16xf32, #tpu.memory_space<vmem>>, vector<32x16xf32>
    %cst_22 = arith.constant dense<0.000000e+00> : vector<32x32xf32>
    %24 = tpu.matmul %23, %22, %cst_22 {dimension_numbers = #tpu.dot_dimension_numbers<[1], [0], [0], [1], [0, 0, 1, 1], [], []>} : vector<32x16xf32>, vector<16x32xf32>, vector<32x32xf32> -> vector<32x32xf32>
    %cst_23 = arith.constant 0.000000e+00 : f32
    %25 = vector.broadcast %cst_23 : f32 to vector<32x32xf32>
    %26 = arith.cmpf ogt, %24, %25 : vector<32x32xf32>
    %27 = arith.extui %26 : vector<32x32xi1> to vector<32x32xi32>
    %28 = arith.sitofp %27 : vector<32x32xi32> to vector<32x32xf32>
    %c0_24 = arith.constant 0 : index
    %c0_25 = arith.constant 0 : index
    %29 = vector.load %arg9[%c0_24, %c0_25] : memref<32x32xf32, #tpu.memory_space<vmem>>, vector<32x32xf32>
    tpu.vector_store %arg9[%c0_24, %c0_25], %28 {strides = array<i32>} : memref<32x32xf32, #tpu.memory_space<vmem>>, vector<32x32xf32>,
    %cst_26 = arith.constant 9.99999997E-7 : f32
    %30 = vector.broadcast %cst_26 : f32 to vector<32x32xf32>
    %31 = arith.addf %24, %30 : vector<32x32xf32>
    %32 = tpu.reciprocal %31 {approx = true} : vector<32x32xf32> -> vector<32x32xf32>
    %cst_27 = arith.constant 0.000000e+00 : f32
    %33 = vector.broadcast %cst_27 : f32 to vector<32x32xf32>
    %34 = arith.select %26, %32, %33 : vector<32x32xi1>, vector<32x32xf32>
    %c0_28 = arith.constant 0 : index
    %c0_29 = arith.constant 0 : index
    %35 = vector.load %arg8[%c0_28, %c0_29] : memref<32x32xf32, #tpu.memory_space<vmem>>, vector<32x32xf32>
    tpu.vector_store %arg8[%c0_28, %c0_29], %34 {strides = array<i32>} : memref<32x32xf32, #tpu.memory_space<vmem>>, vector<32x32xf32>,
    return
  }
  func.func @transform_0(%arg0: i32) -> (i32, i32) {
    %c0_i32 = arith.constant 0 : i32
    %c0_i32_0 = arith.constant 0 : i32
    %c0_i32_1 = arith.constant 0 : i32
    return %c0_i32, %c0_i32_0 : i32, i32
  }
  func.func @transform_1(%arg0: i32) -> (i32, i32) {
    %c0_i32 = arith.constant 0 : i32
    %c0_i32_0 = arith.constant 0 : i32
    %c0_i32_1 = arith.constant 0 : i32
    return %c0_i32, %c0_i32_0 : i32, i32
  }
  func.func @transform_2(%arg0: i32) -> (i32, i32) {
    %c0_i32 = arith.constant 0 : i32
    %c0_i32_0 = arith.constant 0 : i32
    %c0_i32_1 = arith.constant 0 : i32
    return %c0_i32, %c0_i32_0 : i32, i32
  }
  func.func @transform_3(%arg0: i32) -> (i32, i32) {
    %c0_i32 = arith.constant 0 : i32
    %c0_i32_0 = arith.constant 0 : i32
    %c0_i32_1 = arith.constant 0 : i32
    return %c0_i32, %c0_i32_0 : i32, i32
  }
  func.func @transform_4(%arg0: i32) -> (i32, i32) {
    %c0_i32 = arith.constant 0 : i32
    %c0_i32_0 = arith.constant 0 : i32
    return %arg0, %c0_i32 : i32, i32
  }
  func.func @transform_5(%arg0: i32) -> (i32, i32) {
    %c0_i32 = arith.constant 0 : i32
    %c0_i32_0 = arith.constant 0 : i32
    return %arg0, %c0_i32 : i32, i32
  }
  func.func @transform_6(%arg0: i32) -> (i32, i32) {
    %c0_i32 = arith.constant 0 : i32
    %c0_i32_0 = arith.constant 0 : i32
    return %arg0, %c0_i32 : i32, i32
  }
  func.func @transform_7(%arg0: i32) -> (i32, i32) {
    %c0_i32 = arith.constant 0 : i32
    %c0_i32_0 = arith.constant 0 : i32
    return %arg0, %c0_i32 : i32, i32
  }
  func.func @transform_8(%arg0: i32) -> (i32, i32) {
    %c0_i32 = arith.constant 0 : i32
    %c0_i32_0 = arith.constant 0 : i32
    return %arg0, %c0_i32 : i32, i32
  }
}

</mosaic_0001>

<bundles_post_ra>
// kernel: tpu_custom_call.1
= control target key start
LH: loop header
LB: loop body
LE: loop exit
PB: predicated region body
PF: predicated region fallthrough
CT: control target
= control target key end

     0   :  { %s1191_s27 = smov 0   ;;  %s1321_s0 = inlined_call_operand.vmem [shape: bf16[32,16], index: 0, kind: input, shape index: {}]   ;;  %s1322_s1 = inlined_call_operand.vmem [shape: bf16[16,32], index: 1, kind: input, shape index: {}]   ;;  %s1323_s2 = inlined_call_operand.vmem [shape: f32[32,16], index: 2, kind: input, shape index: {}]   ;;  %s1324_s3 = inlined_call_operand.vmem [shape: f32[16,32], index: 3, kind: input, shape index: {}]   ;;  %s1325_s4 = inlined_call_operand.vmem [shape: bf16[96,16], index: 4, kind: input, shape index: {}]   ;;  %s1326_s5 = inlined_call_operand.vmem [shape: f32[32,16], index: 5, kind: input, shape index: {}]   ;;  %s1327_s6 = inlined_call_operand.vmem [shape: f32[192,32], index: 6, kind: output, shape index: {0}]   ;;  %s1328_s7 = inlined_call_operand.vmem [shape: f32[64,32], index: 7, kind: output, shape index: {1}]   ;;  %s1329_s8 = inlined_call_operand.vmem [shape: f32[64,32], index: 8, kind: output, shape index: {2}]  }
   0x1 LB: > { %s1197_s28 = sadd.s32 4294967295, %s1142_s27   ;;  %p996_p0 = scmp.ge.s32.totalorder %s1142_s27, 1  ;;  %s1142_s27 = sphi %s1191_s27, %s19_s27  }
   0x2   : > { %p279_p1 = scmp.lt.s32.totalorder %s1142_s27, 3 }
   0x4   : > { %p280_p2 = pnand %p996_p0, %p279_p1 }
   0x5   : > { %v1122_v0 = vld [vmem:[%s1322_s1] sm:$0xff] (!%p280_p2)   ;;  %v1144_v1 = vmov (!%p280_p2), 0.0   ;;  %s328_s9 = smul.u32 (!%p280_p2), 6, %s1197_s28  ;;  %v641_v3 = vld [vmem:[%s1324_s3 + $0x8] sm:$0xff] (!%p280_p2)  ;;  %vm1145_vm0 = vmmov (!%p280_p2), 0   ;;  %vm388_vm1 = vcmask (!%p280_p2), 130048  }
   0x6   : > { %283 = sbr.rel (%p280_p2) target bundleno = 493 (0x1ed), region = 44  ;;  %1055 = vmatprep.subr.bf16.mxu0 (!%p280_p2), %v1144_v1  ;;  %v640_v2 = vld [vmem:[%s1324_s3] sm:$0xff] (!%p280_p2)  ;;  %1057 = vmatprep.mubr.msk.bf16.mxu0 (!%p280_p2), %vm1145_vm0, %v1144_v1  ;;  %s998_s18 = sshll.u32 (!%p280_p2), %s1197_s28, 1  ;;  %v1127_v16 = vld [vmem:[%s1321_s0 + $0x8] sm:$0xff] (!%p280_p2)   ;;  %v725_v32 = vld [vmem:[%s1323_s2 + $0x10] sm:$0xff] (!%p280_p2)  ;;  %vm527_vm2 = vcmask (!%p280_p2), 261120  }
   0x7   : > { %1056 = vmatpush3.bf16.msra.mxu0 (!%p280_p2), %v1122_v0  ;;  %v1104_v4 = vpack.c.bf16 (!%p280_p2), %v641_v3, %v640_v2  ;;  %p329_p3 = scmp.lt.s32.totalorder (!%p280_p2), %s328_s9, 11  ;;  %p335_p4 = scmp.lt.s32.totalorder (!%p280_p2), %s998_s18, 3  ;;  %v1126_v10 = vld [vmem:[%s1321_s0] sm:$0xff] (!%p280_p2)   ;;  %v724_v31 = vld [vmem:[%s1323_s2 + $0x8] sm:$0xff] (!%p280_p2)  ;;  %v726_v33 = vld [vmem:[%s1323_s2 + $0x18] sm:$0xff] (!%p280_p2) }
   0x8   : > { %1071 = vmatprep.mubr.msk.bf16.mxu1 (!%p280_p2), %vm388_vm1, %v1126_v10  ;;  %v723_v27 = vld [vmem:[%s1323_s2] sm:$0xff] (!%p280_p2)  ;;  %s340_s15 = smul.u32 (!%p280_p2), 12, %s1197_s28  ;;  %s1001_s20 = sshll.u32 (!%p280_p2), %s1197_s28, 2 }
   0x9   : > { %1105 = vmatprep.subr.bf16.mxu0 (!%p280_p2), %v1104_v4  ;;  %p347_p6 = scmp.lt.s32.totalorder (!%p280_p2), %s1001_s20, 7 }
   0xa   : > { %p341_p5 = scmp.lt.s32.totalorder (!%p280_p2), %s340_s15, 23 }
   0xd   : > { %s1331_s9 = smov (!%p329_p3, %s328_s9), 11  ;;  %s1333_s18 = smov (!%p335_p4, %s998_s18), 3 }
   0xe   : > { %s997_s14 = sshll.u32 %s1331_s9, 2  ;;  %s999_s19 = sshll.u32 %s1333_s18, 3 }
   0xf   : > { %s332_s17 = scalar_lea.vmem %s1325_s4, %s997_s14  ;;  %s338_s22 = scalar_lea.vmem %s1326_s5, %s999_s19 }
  0x10   : > { %v1123_v5 = vld [vmem:[%s332_s17] sm:$0xff]   ;;  %v1124_v6 = vld [vmem:[%s332_s17 + $0x8] sm:$0xff]   ;;  %v1125_v7 = vld [vmem:[%s332_s17 + $0x10] sm:$0xff]   ;;  %s1335_s15 = smov (!%p341_p5, %s340_s15), 23  ;;  %s1337_s20 = smov (!%p347_p6, %s1001_s20), 7 }
  0x11   : > { %1058 = vmatmul.mubr.msk.bf16.vlgmr.msra.gmra.mrb[0].mxu0 %vm388_vm1, %v1123_v5  ;;  %v638_v8 = vld [vmem:[%s338_s22] sm:$0xff]  ;;  %v639_v9 = vld [vmem:[%s338_s22 + $0x8] sm:$0xff]  ;;  %s1000_s16 = sshll.u32 %s1335_s15, 3  ;;  %s1002_s28 = sshll.u32 %s1337_s20, 3 }
  0x12   : > { %1107 = vmatpush3.bf16.msra.mxu0 %v1104_v4  ;;  %1061 = vmatprep.mubr.msk.bf16.mxu0 %vm1145_vm0, %v1144_v1  ;;  %s1262_s19 = scalar_lea.vmem %s1327_s6, %s1000_s16  ;;  %s356_s23 = scalar_lea.vmem %s1329_s8, %s1002_s28 }
  0x13   : > { %s350_s26 = scalar_lea.vmem %s1328_s7, %s1002_s28 }
  0x19   : > { %1062 = vmatmul.mubr.msk.bf16.gmra.mrb[4].mxu0 %vm388_vm1, %v1124_v6 }
  0x1a   : > { %1065 = vmatprep.mubr.msk.bf16.mxu0 %vm1145_vm0, %v1144_v1 }
  0x21   : > { %1066 = vmatmul.mubr.msk.bf16.gmra.mrb[8].mxu0 %vm388_vm1, %v1125_v7 }
  0x22   : > { %1091 = vmatprep.mubr.msk.f32.mxu0 %vm388_vm1, %v638_v8 }
  0x29   : > { %1092 = vmatmul.mubr.msk.f32.vlgmr.msra.gmra.mrb[12].mxu0 %vm388_vm1, %v639_v9 }
  0xe4   : > { %v432_v11 = vpop.f32.mrb[0].mxu0 }
  0xe5   : > { %v1059_v12 = vpop.f32.mrb[1].mxu0 }
  0xe6   : > { %v435_v13 = vpop.f32.mrb[2].mxu0 }
  0xe7   : > { %v455_v14 = vpack.c.bf16 %v435_v13, %v432_v11  ;;  %v1060_v15 = vpop.f32.mrb[3].mxu0 }
  0xe9   : > { %1069 = vmatprep.subr.bf16.mxu1 %v455_v14 }
  0xea   : > { %1070 = vmatpush3.bf16.msra.mxu1 %v455_v14 }
  0xec   : > { %v440_v17 = vpop.f32.mrb[4].mxu0 }
  0xed   : > { %v1063_v18 = vpop.f32.mrb[5].mxu0  ;;  %1072 = vmatmul.mubr.msk.bf16.vlgmr.msra.gmra.mrb[0].mxu1 %vm388_vm1, %v1127_v16 }
  0xee   : > { %v443_v19 = vpop.f32.mrb[6].mxu0  ;;  %1077 = vmatprep.mubr.msk.bf16.mxu1 %vm388_vm1, %v1126_v10 }
  0xef   : > { %v456_v20 = vpack.c.bf16 %v443_v19, %v440_v17  ;;  %v1064_v21 = vpop.f32.mrb[7].mxu0 }
  0xf1   : > { %1075 = vmatprep.subr.bf16.mxu1 %v456_v20 }
  0xf2   : > { %1076 = vmatpush3.bf16.msra.mxu1 %v456_v20 }
  0xf4   : > { %v448_v22 = vpop.f32.mrb[8].mxu0 }
  0xf5   : > { %v1067_v23 = vpop.f32.mrb[9].mxu0  ;;  %1078 = vmatmul.mubr.msk.bf16.vlgmr.msra.gmra.mrb[4].mxu1 %vm388_vm1, %v1127_v16 }
  0xf6   : > { %v451_v24 = vpop.f32.mrb[10].mxu0  ;;  %1083 = vmatprep.mubr.msk.bf16.mxu1 %vm388_vm1, %v1126_v10 }
  0xf7   : > { %v457_v25 = vpack.c.bf16 %v451_v24, %v448_v22  ;;  %v1068_v26 = vpop.f32.mrb[11].mxu0 }
  0xf9   : > { %1081 = vmatprep.subr.bf16.mxu1 %v457_v25 }
  0xfa   : > { %1082 = vmatpush3.bf16.msra.mxu1 %v457_v25 }
  0xfc   : > { %v1093_v28 = vpop.f32.mrb[12].mxu0 }
  0xfd   : > { %1084 = vmatmul.mubr.msk.bf16.vlgmr.msra.gmra.mrb[8].mxu1 %vm388_vm1, %v1127_v16  ;;  %v714_v29 = vpop.f32.mrb[13].mxu0 }
  0xfe   : > { %v1108_v30 = vpack.c.bf16 %v1093_v28, %v714_v29  ;;  %1098 = vmatprep.mubr.msk.f32.mxu1 %vm388_vm1, %v723_v27 }
 0x100   : > { %1109 = vmatprep.subr.bf16.mxu1 %v1108_v30 }
 0x101   : > { %1111 = vmatpush3.bf16.msra.mxu1 %v1108_v30 }
 0x105   : > { %1099 = vmatmul.mubr.msk.f32.vlgmr.msra.gmra.mrb[12].mxu1 %vm388_vm1, %v724_v31 }
 0x106   : > { %1101 = vmatprep.mubr.msk.f32.mxu1 %vm388_vm1, %v725_v32 }
 0x109   : > { %1102 = vmatmul.mubr.msk.f32.gmra.mrb[14].mxu1 %vm388_vm1, %v726_v33 }
 0x1c0   : > { %v1073_v34 = vpop.f32.mrb[0].mxu1 }
 0x1c1   : > { %v521_v35 = vadd.f32 -1.0, %v1073_v34  ;;  %v512_v36 = vpop.f32.mrb[1].mxu1 }
 0x1c2   : > { %v513_v37 = vadd.f32 -1.0, %v512_v36  ;;  %v1074_v38 = vpop.f32.mrb[2].mxu1 }
 0x1c3   : > { %530 = vst.msk [vmem:[%s1262_s19 + $0x10] sm:$0xff] %vm527_vm2, %v521_v35  ;;  %v524_v39 = vadd.f32 -1.0, %v1074_v38  ;;  %v515_v40 = vpop.f32.mrb[3].mxu1 }
 0x1c4   : > { %528 = vst.msk [vmem:[%s1262_s19] sm:$0xff] %vm527_vm2, %v513_v37  ;;  %v516_v41 = vadd.f32 -1.0, %v515_v40 }
 0x1c5   : > { %531 = vst.msk [vmem:[%s1262_s19 + $0x18] sm:$0xff] %vm527_vm2, %v524_v39 }
 0x1c6   : > { %529 = vst.msk [vmem:[%s1262_s19 + $0x8] sm:$0xff] %vm527_vm2, %v516_v41 }
 0x1c8   : > { %v1079_v42 = vpop.f32.mrb[4].mxu1 }
 0x1c9   : > { %v575_v43 = vadd.f32 -1.0, %v1079_v42  ;;  %v566_v44 = vpop.f32.mrb[5].mxu1 }
 0x1ca   : > { %v567_v45 = vadd.f32 -1.0, %v566_v44  ;;  %v1080_v46 = vpop.f32.mrb[6].mxu1 }
 0x1cb   : > { %583 = vst.msk [vmem:[%s1262_s19 + $0x30] sm:$0xff] %vm527_vm2, %v575_v43  ;;  %v578_v47 = vadd.f32 -1.0, %v1080_v46  ;;  %v569_v48 = vpop.f32.mrb[7].mxu1 }
 0x1cc   : > { %581 = vst.msk [vmem:[%s1262_s19 + $0x20] sm:$0xff] %vm527_vm2, %v567_v45  ;;  %v570_v49 = vadd.f32 -1.0, %v569_v48 }
 0x1cd   : > { %584 = vst.msk [vmem:[%s1262_s19 + $0x38] sm:$0xff] %vm527_vm2, %v578_v47 }
 0x1ce   : > { %582 = vst.msk [vmem:[%s1262_s19 + $0x28] sm:$0xff] %vm527_vm2, %v570_v49 }
 0x1d0   : > { %v1085_v50 = vpop.f32.mrb[8].mxu1 }
 0x1d1   : > { %v628_v51 = vadd.f32 -1.0, %v1085_v50  ;;  %v619_v52 = vpop.f32.mrb[9].mxu1 }
 0x1d2   : > { %v620_v53 = vadd.f32 -1.0, %v619_v52  ;;  %v1086_v54 = vpop.f32.mrb[10].mxu1 }
 0x1d3   : > { %636 = vst.msk [vmem:[%s1262_s19 + $0x50] sm:$0xff] %vm527_vm2, %v628_v51  ;;  %v631_v55 = vadd.f32 -1.0, %v1086_v54  ;;  %v622_v56 = vpop.f32.mrb[11].mxu1 }
 0x1d4   : > { %634 = vst.msk [vmem:[%s1262_s19 + $0x40] sm:$0xff] %vm527_vm2, %v620_v53  ;;  %v623_v57 = vadd.f32 -1.0, %v622_v56 }
 0x1d5   : > { %637 = vst.msk [vmem:[%s1262_s19 + $0x58] sm:$0xff] %vm527_vm2, %v631_v55 }
 0x1d6   : > { %635 = vst.msk [vmem:[%s1262_s19 + $0x48] sm:$0xff] %vm527_vm2, %v623_v57 }
 0x1d8   : > { %v1100_v58 = vpop.f32.mrb[12].mxu1 }
 0x1d9   : > { %vm825_vm3 = vcmp.gt.f32.partialorder %v1100_v58, 0.0  ;;  %v841_v59 = vadd.f32 1e-06, %v1100_v58  ;;  %v805_v60 = vpop.f32.mrb[13].mxu1 }
 0x1da   : > { %vm824_vm4 = vcmp.gt.f32.partialorder %v805_v60, 0.0  ;;  %v840_v61 = vadd.f32 1e-06, %v805_v60  ;;  %v1027_v63 = vsel %vm825_vm3, 1.0, %v1144_v1 }
 0x1db   : > { %1128 = vrcp.f32 %v841_v59  ;;  %v1026_v62 = vsel %vm824_vm4, 1.0, %v1144_v1  ;;  %837 = vst.msk [vmem:[%s356_s23 + $0x8] sm:$0xff] %vm527_vm2, %v1027_v63 }
 0x1dc   : > { %836 = vst.msk [vmem:[%s356_s23] sm:$0xff] %vm527_vm2, %v1026_v62  ;;  %1130 = vrcp.f32 %v840_v61  ;;  %v1103_v0 = vpop.f32.mrb[14].mxu1 }
 0x1dd   : > { %vm827_vm5 = vcmp.gt.f32.partialorder %v1103_v0, 0.0  ;;  %v843_v2 = vadd.f32 1e-06, %v1103_v0  ;;  %v815_v3 = vpop.f32.mrb[15].mxu1 }
 0x1de   : > { %vm826_vm6 = vcmp.gt.f32.partialorder %v815_v3, 0.0  ;;  %v842_v4 = vadd.f32 1e-06, %v815_v3  ;;  %v1029_v6 = vsel %vm827_vm5, 1.0, %v1144_v1 }
 0x1df   : > { %1132 = vrcp.f32 %v843_v2  ;;  %v1028_v5 = vsel %vm826_vm6, 1.0, %v1144_v1  ;;  %839 = vst.msk [vmem:[%s356_s23 + $0x18] sm:$0xff] %vm527_vm2, %v1029_v6 }
 0x1e0   : > { %838 = vst.msk [vmem:[%s356_s23 + $0x10] sm:$0xff] %vm527_vm2, %v1028_v5  ;;  %1134 = vrcp.f32 %v842_v4 }
 0x1e5   : > { %v1129_v7 = vpop.eup %1128 }
 0x1e6   : > { %v1131_v8 = vpop.eup %1130  ;;  %v849_v10 = vsel %vm825_vm3, %v1129_v7, 0.0 }
 0x1e7   : > { %v848_v9 = vsel %vm824_vm4, %v1131_v8, 0.0  ;;  %853 = vst.msk [vmem:[%s350_s26 + $0x8] sm:$0xff] %vm527_vm2, %v849_v10 }
 0x1e8   : > { %852 = vst.msk [vmem:[%s350_s26] sm:$0xff] %vm527_vm2, %v848_v9 }
 0x1e9   : > { %v1133_v11 = vpop.eup %1132 }
 0x1ea   : > { %v1135_v1 = vpop.eup %1134  ;;  %v851_v13 = vsel %vm827_vm5, %v1133_v11, 0.0 }
 0x1eb   : > { %v850_v12 = vsel %vm826_vm6, %v1135_v1, 0.0  ;;  %855 = vst.msk [vmem:[%s350_s26 + $0x18] sm:$0xff] %vm527_vm2, %v851_v13 }
 0x1ec   : > { %854 = vst.msk [vmem:[%s350_s26 + $0x10] sm:$0xff] %vm527_vm2, %v850_v12 }
 0x1ed PF: > { %s19_s27 = sadd.s32 1, %s1142_s27  }
 0x1ee   : > { %p16_p7 = scmp.ge.s32.totalorder %s19_s27, 4  }
 0x1f0   :  { %18 = sbr.rel (!%p16_p7) target bundleno = 1 (0x1), region = 101 }

// kernel: tpu_custom_call.1
= control target key start
LH: loop header
LB: loop body
LE: loop exit
PB: predicated region body
PF: predicated region fallthrough
CT: control target
= control target key end

     0   :  { %s1191_s27 = smov 0   ;;  %s1321_s0 = inlined_call_operand.vmem [shape: bf16[32,16], index: 0, kind: input, shape index: {}]   ;;  %s1322_s1 = inlined_call_operand.vmem [shape: bf16[16,32], index: 1, kind: input, shape index: {}]   ;;  %s1323_s2 = inlined_call_operand.vmem [shape: f32[32,16], index: 2, kind: input, shape index: {}]   ;;  %s1324_s3 = inlined_call_operand.vmem [shape: f32[16,32], index: 3, kind: input, shape index: {}]   ;;  %s1325_s4 = inlined_call_operand.vmem [shape: bf16[96,16], index: 4, kind: input, shape index: {}]   ;;  %s1326_s5 = inlined_call_operand.vmem [shape: f32[32,16], index: 5, kind: input, shape index: {}]   ;;  %s1327_s6 = inlined_call_operand.vmem [shape: f32[192,32], index: 6, kind: output, shape index: {0}]   ;;  %s1328_s7 = inlined_call_operand.vmem [shape: f32[64,32], index: 7, kind: output, shape index: {1}]   ;;  %s1329_s8 = inlined_call_operand.vmem [shape: f32[64,32], index: 8, kind: output, shape index: {2}]  }
   0x1 LB: > { %s1197_s28 = sadd.s32 4294967295, %s1142_s27   ;;  %p996_p0 = scmp.ge.s32.totalorder %s1142_s27, 1  ;;  %s1142_s27 = sphi %s1191_s27, %s19_s27  }
   0x2   : > { %p279_p1 = scmp.lt.s32.totalorder %s1142_s27, 3 }
   0x4   : > { %p280_p2 = pnand %p996_p0, %p279_p1 }
   0x5   : > { %v1122_v0 = vld [vmem:[%s1322_s1] sm:$0xff] (!%p280_p2)   ;;  %v1144_v1 = vmov (!%p280_p2), 0.0   ;;  %s328_s9 = smul.u32 (!%p280_p2), 6, %s1197_s28  ;;  %v641_v3 = vld [vmem:[%s1324_s3 + $0x8] sm:$0xff] (!%p280_p2)  ;;  %vm1145_vm0 = vmmov (!%p280_p2), 0   ;;  %vm388_vm1 = vcmask (!%p280_p2), 130048  }
   0x6   : > { %283 = sbr.rel (%p280_p2) target bundleno = 493 (0x1ed), region = 44  ;;  %1055 = vmatprep.subr.bf16.mxu0 (!%p280_p2), %v1144_v1  ;;  %v640_v2 = vld [vmem:[%s1324_s3] sm:$0xff] (!%p280_p2)  ;;  %1057 = vmatprep.mubr.msk.bf16.mxu0 (!%p280_p2), %vm1145_vm0, %v1144_v1  ;;  %s998_s18 = sshll.u32 (!%p280_p2), %s1197_s28, 1  ;;  %v1127_v16 = vld [vmem:[%s1321_s0 + $0x8] sm:$0xff] (!%p280_p2)   ;;  %v725_v32 = vld [vmem:[%s1323_s2 + $0x10] sm:$0xff] (!%p280_p2)  ;;  %vm527_vm2 = vcmask (!%p280_p2), 261120  }
   0x7   : > { %1056 = vmatpush3.bf16.msra.mxu0 (!%p280_p2), %v1122_v0  ;;  %v1104_v4 = vpack.c.bf16 (!%p280_p2), %v641_v3, %v640_v2  ;;  %p329_p3 = scmp.lt.s32.totalorder (!%p280_p2), %s328_s9, 11  ;;  %p335_p4 = scmp.lt.s32.totalorder (!%p280_p2), %s998_s18, 3  ;;  %v1126_v10 = vld [vmem:[%s1321_s0] sm:$0xff] (!%p280_p2)   ;;  %v724_v31 = vld [vmem:[%s1323_s2 + $0x8] sm:$0xff] (!%p280_p2)  ;;  %v726_v33 = vld [vmem:[%s1323_s2 + $0x18] sm:$0xff] (!%p280_p2) }
   0x8   : > { %1071 = vmatprep.mubr.msk.bf16.mxu1 (!%p280_p2), %vm388_vm1, %v1126_v10  ;;  %v723_v27 = vld [vmem:[%s1323_s2] sm:$0xff] (!%p280_p2)  ;;  %s340_s15 = smul.u32 (!%p280_p2), 12, %s1197_s28  ;;  %s1001_s20 = sshll.u32 (!%p280_p2), %s1197_s28, 2 }
   0x9   : > { %1105 = vmatprep.subr.bf16.mxu0 (!%p280_p2), %v1104_v4  ;;  %p347_p6 = scmp.lt.s32.totalorder (!%p280_p2), %s1001_s20, 7 }
   0xa   : > { %p341_p5 = scmp.lt.s32.totalorder (!%p280_p2), %s340_s15, 23 }
   0xd   : > { %s1331_s9 = smov (!%p329_p3, %s328_s9), 11  ;;  %s1333_s18 = smov (!%p335_p4, %s998_s18), 3 }
   0xe   : > { %s997_s14 = sshll.u32 %s1331_s9, 2  ;;  %s999_s19 = sshll.u32 %s1333_s18, 3 }
   0xf   : > { %s332_s17 = scalar_lea.vmem %s1325_s4, %s997_s14  ;;  %s338_s22 = scalar_lea.vmem %s1326_s5, %s999_s19 }
  0x10   : > { %v1123_v5 = vld [vmem:[%s332_s17] sm:$0xff]   ;;  %v1124_v6 = vld [vmem:[%s332_s17 + $0x8] sm:$0xff]   ;;  %v1125_v7 = vld [vmem:[%s332_s17 + $0x10] sm:$0xff]   ;;  %s1335_s15 = smov (!%p341_p5, %s340_s15), 23  ;;  %s1337_s20 = smov (!%p347_p6, %s1001_s20), 7 }
  0x11   : > { %1058 = vmatmul.mubr.msk.bf16.vlgmr.msra.gmra.mrb[0].mxu0 %vm388_vm1, %v1123_v5  ;;  %v638_v8 = vld [vmem:[%s338_s22] sm:$0xff]  ;;  %v639_v9 = vld [vmem:[%s338_s22 + $0x8] sm:$0xff]  ;;  %s1000_s16 = sshll.u32 %s1335_s15, 3  ;;  %s1002_s28 = sshll.u32 %s1337_s20, 3 }
  0x12   : > { %1107 = vmatpush3.bf16.msra.mxu0 %v1104_v4  ;;  %1061 = vmatprep.mubr.msk.bf16.mxu0 %vm1145_vm0, %v1144_v1  ;;  %s1262_s19 = scalar_lea.vmem %s1327_s6, %s1000_s16  ;;  %s356_s23 = scalar_lea.vmem %s1329_s8, %s1002_s28 }
  0x13   : > { %s350_s26 = scalar_lea.vmem %s1328_s7, %s1002_s28 }
  0x19   : > { %1062 = vmatmul.mubr.msk.bf16.gmra.mrb[4].mxu0 %vm388_vm1, %v1124_v6 }
  0x1a   : > { %1065 = vmatprep.mubr.msk.bf16.mxu0 %vm1145_vm0, %v1144_v1 }
  0x21   : > { %1066 = vmatmul.mubr.msk.bf16.gmra.mrb[8].mxu0 %vm388_vm1, %v1125_v7 }
  0x22   : > { %1091 = vmatprep.mubr.msk.f32.mxu0 %vm388_vm1, %v638_v8 }
  0x29   : > { %1092 = vmatmul.mubr.msk.f32.vlgmr.msra.gmra.mrb[12].mxu0 %vm388_vm1, %v639_v9 }
  0xe4   : > { %v432_v11 = vpop.f32.mrb[0].mxu0 }
  0xe5   : > { %v1059_v12 = vpop.f32.mrb[1].mxu0 }
  0xe6   : > { %v435_v13 = vpop.f32.mrb[2].mxu0 }
  0xe7   : > { %v455_v14 = vpack.c.bf16 %v435_v13, %v432_v11  ;;  %v1060_v15 = vpop.f32.mrb[3].mxu0 }
  0xe9   : > { %1069 = vmatprep.subr.bf16.mxu1 %v455_v14 }
  0xea   : > { %1070 = vmatpush3.bf16.msra.mxu1 %v455_v14 }
  0xec   : > { %v440_v17 = vpop.f32.mrb[4].mxu0 }
  0xed   : > { %v1063_v18 = vpop.f32.mrb[5].mxu0  ;;  %1072 = vmatmul.mubr.msk.bf16.vlgmr.msra.gmra.mrb[0].mxu1 %vm388_vm1, %v1127_v16 }
  0xee   : > { %v443_v19 = vpop.f32.mrb[6].mxu0  ;;  %1077 = vmatprep.mubr.msk.bf16.mxu1 %vm388_vm1, %v1126_v10 }
  0xef   : > { %v456_v20 = vpack.c.bf16 %v443_v19, %v440_v17  ;;  %v1064_v21 = vpop.f32.mrb[7].mxu0 }
  0xf1   : > { %1075 = vmatprep.subr.bf16.mxu1 %v456_v20 }
  0xf2   : > { %1076 = vmatpush3.bf16.msra.mxu1 %v456_v20 }
  0xf4   : > { %v448_v22 = vpop.f32.mrb[8].mxu0 }
  0xf5   : > { %v1067_v23 = vpop.f32.mrb[9].mxu0  ;;  %1078 = vmatmul.mubr.msk.bf16.vlgmr.msra.gmra.mrb[4].mxu1 %vm388_vm1, %v1127_v16 }
  0xf6   : > { %v451_v24 = vpop.f32.mrb[10].mxu0  ;;  %1083 = vmatprep.mubr.msk.bf16.mxu1 %vm388_vm1, %v1126_v10 }
  0xf7   : > { %v457_v25 = vpack.c.bf16 %v451_v24, %v448_v22  ;;  %v1068_v26 = vpop.f32.mrb[11].mxu0 }
  0xf9   : > { %1081 = vmatprep.subr.bf16.mxu1 %v457_v25 }
  0xfa   : > { %1082 = vmatpush3.bf16.msra.mxu1 %v457_v25 }
  0xfc   : > { %v1093_v28 = vpop.f32.mrb[12].mxu0 }
  0xfd   : > { %1084 = vmatmul.mubr.msk.bf16.vlgmr.msra.gmra.mrb[8].mxu1 %vm388_vm1, %v1127_v16  ;;  %v714_v29 = vpop.f32.mrb[13].mxu0 }
  0xfe   : > { %v1108_v30 = vpack.c.bf16 %v1093_v28, %v714_v29  ;;  %1098 = vmatprep.mubr.msk.f32.mxu1 %vm388_vm1, %v723_v27 }
 0x100   : > { %1109 = vmatprep.subr.bf16.mxu1 %v1108_v30 }
 0x101   : > { %1111 = vmatpush3.bf16.msra.mxu1 %v1108_v30 }
 0x105   : > { %1099 = vmatmul.mubr.msk.f32.vlgmr.msra.gmra.mrb[12].mxu1 %vm388_vm1, %v724_v31 }
 0x106   : > { %1101 = vmatprep.mubr.msk.f32.mxu1 %vm388_vm1, %v725_v32 }
 0x109   : > { %1102 = vmatmul.mubr.msk.f32.gmra.mrb[14].mxu1 %vm388_vm1, %v726_v33 }
 0x1c0   : > { %v1073_v34 = vpop.f32.mrb[0].mxu1 }
 0x1c1   : > { %v521_v35 = vadd.f32 -1.0, %v1073_v34  ;;  %v512_v36 = vpop.f32.mrb[1].mxu1 }
 0x1c2   : > { %v513_v37 = vadd.f32 -1.0, %v512_v36  ;;  %v1074_v38 = vpop.f32.mrb[2].mxu1 }
 0x1c3   : > { %530 = vst.msk [vmem:[%s1262_s19 + $0x10] sm:$0xff] %vm527_vm2, %v521_v35  ;;  %v524_v39 = vadd.f32 -1.0, %v1074_v38  ;;  %v515_v40 = vpop.f32.mrb[3].mxu1 }
 0x1c4   : > { %528 = vst.msk [vmem:[%s1262_s19] sm:$0xff] %vm527_vm2, %v513_v37  ;;  %v516_v41 = vadd.f32 -1.0, %v515_v40 }
 0x1c5   : > { %531 = vst.msk [vmem:[%s1262_s19 + $0x18] sm:$0xff] %vm527_vm2, %v524_v39 }
 0x1c6   : > { %529 = vst.msk [vmem:[%s1262_s19 + $0x8] sm:$0xff] %vm527_vm2, %v516_v41 }
 0x1c8   : > { %v1079_v42 = vpop.f32.mrb[4].mxu1 }
 0x1c9   : > { %v575_v43 = vadd.f32 -1.0, %v1079_v42  ;;  %v566_v44 = vpop.f32.mrb[5].mxu1 }
 0x1ca   : > { %v567_v45 = vadd.f32 -1.0, %v566_v44  ;;  %v1080_v46 = vpop.f32.mrb[6].mxu1 }
 0x1cb   : > { %583 = vst.msk [vmem:[%s1262_s19 + $0x30] sm:$0xff] %vm527_vm2, %v575_v43  ;;  %v578_v47 = vadd.f32 -1.0, %v1080_v46  ;;  %v569_v48 = vpop.f32.mrb[7].mxu1 }
 0x1cc   : > { %581 = vst.msk [vmem:[%s1262_s19 + $0x20] sm:$0xff] %vm527_vm2, %v567_v45  ;;  %v570_v49 = vadd.f32 -1.0, %v569_v48 }
 0x1cd   : > { %584 = vst.msk [vmem:[%s1262_s19 + $0x38] sm:$0xff] %vm527_vm2, %v578_v47 }
 0x1ce   : > { %582 = vst.msk [vmem:[%s1262_s19 + $0x28] sm:$0xff] %vm527_vm2, %v570_v49 }
 0x1d0   : > { %v1085_v50 = vpop.f32.mrb[8].mxu1 }
 0x1d1   : > { %v628_v51 = vadd.f32 -1.0, %v1085_v50  ;;  %v619_v52 = vpop.f32.mrb[9].mxu1 }
 0x1d2   : > { %v620_v53 = vadd.f32 -1.0, %v619_v52  ;;  %v1086_v54 = vpop.f32.mrb[10].mxu1 }
 0x1d3   : > { %636 = vst.msk [vmem:[%s1262_s19 + $0x50] sm:$0xff] %vm527_vm2, %v628_v51  ;;  %v631_v55 = vadd.f32 -1.0, %v1086_v54  ;;  %v622_v56 = vpop.f32.mrb[11].mxu1 }
 0x1d4   : > { %634 = vst.msk [vmem:[%s1262_s19 + $0x40] sm:$0xff] %vm527_vm2, %v620_v53  ;;  %v623_v57 = vadd.f32 -1.0, %v622_v56 }
 0x1d5   : > { %637 = vst.msk [vmem:[%s1262_s19 + $0x58] sm:$0xff] %vm527_vm2, %v631_v55 }
 0x1d6   : > { %635 = vst.msk [vmem:[%s1262_s19 + $0x48] sm:$0xff] %vm527_vm2, %v623_v57 }
 0x1d8   : > { %v1100_v58 = vpop.f32.mrb[12].mxu1 }
 0x1d9   : > { %vm825_vm3 = vcmp.gt.f32.partialorder %v1100_v58, 0.0  ;;  %v841_v59 = vadd.f32 1e-06, %v1100_v58  ;;  %v805_v60 = vpop.f32.mrb[13].mxu1 }
 0x1da   : > { %vm824_vm4 = vcmp.gt.f32.partialorder %v805_v60, 0.0  ;;  %v840_v61 = vadd.f32 1e-06, %v805_v60  ;;  %v1027_v63 = vsel %vm825_vm3, 1.0, %v1144_v1 }
 0x1db   : > { %1128 = vrcp.f32 %v841_v59  ;;  %v1026_v62 = vsel %vm824_vm4, 1.0, %v1144_v1  ;;  %837 = vst.msk [vmem:[%s356_s23 + $0x8] sm:$0xff] %vm527_vm2, %v1027_v63 }
 0x1dc   : > { %836 = vst.msk [vmem:[%s356_s23] sm:$0xff] %vm527_vm2, %v1026_v62  ;;  %1130 = vrcp.f32 %v840_v61  ;;  %v1103_v0 = vpop.f32.mrb[14].mxu1 }
 0x1dd   : > { %vm827_vm5 = vcmp.gt.f32.partialorder %v1103_v0, 0.0  ;;  %v843_v2 = vadd.f32 1e-06, %v1103_v0  ;;  %v815_v3 = vpop.f32.mrb[15].mxu1 }
 0x1de   : > { %vm826_vm6 = vcmp.gt.f32.partialorder %v815_v3, 0.0  ;;  %v842_v4 = vadd.f32 1e-06, %v815_v3  ;;  %v1029_v6 = vsel %vm827_vm5, 1.0, %v1144_v1 }
 0x1df   : > { %1132 = vrcp.f32 %v843_v2  ;;  %v1028_v5 = vsel %vm826_vm6, 1.0, %v1144_v1  ;;  %839 = vst.msk [vmem:[%s356_s23 + $0x18] sm:$0xff] %vm527_vm2, %v1029_v6 }
 0x1e0   : > { %838 = vst.msk [vmem:[%s356_s23 + $0x10] sm:$0xff] %vm527_vm2, %v1028_v5  ;;  %1134 = vrcp.f32 %v842_v4 }
 0x1e5   : > { %v1129_v7 = vpop.eup %1128 }
 0x1e6   : > { %v1131_v8 = vpop.eup %1130  ;;  %v849_v10 = vsel %vm825_vm3, %v1129_v7, 0.0 }
 0x1e7   : > { %v848_v9 = vsel %vm824_vm4, %v1131_v8, 0.0  ;;  %853 = vst.msk [vmem:[%s350_s26 + $0x8] sm:$0xff] %vm527_vm2, %v849_v10 }
 0x1e8   : > { %852 = vst.msk [vmem:[%s350_s26] sm:$0xff] %vm527_vm2, %v848_v9 }
 0x1e9   : > { %v1133_v11 = vpop.eup %1132 }
 0x1ea   : > { %v1135_v1 = vpop.eup %1134  ;;  %v851_v13 = vsel %vm827_vm5, %v1133_v11, 0.0 }
 0x1eb   : > { %v850_v12 = vsel %vm826_vm6, %v1135_v1, 0.0  ;;  %855 = vst.msk [vmem:[%s350_s26 + $0x18] sm:$0xff] %vm527_vm2, %v851_v13 }
 0x1ec   : > { %854 = vst.msk [vmem:[%s350_s26 + $0x10] sm:$0xff] %vm527_vm2, %v850_v12 }
 0x1ed PF: > { %s19_s27 = sadd.s32 1, %s1142_s27  }
 0x1ee   : > { %p16_p7 = scmp.ge.s32.totalorder %s19_s27, 4  }
 0x1f0   :  { %18 = sbr.rel (!%p16_p7) target bundleno = 1 (0x1), region = 101 }

</bundles_post_ra>
